<compile_context>
chip_gen: v7x
topology: tpu7x:2x2x1
jax: 0.10.0
libtpu: 0.0.40
codegen_flags: <defaults>
</compile_context>

<pallas_src>
import math
import functools

import jax
import jax.numpy as jnp
from jax import lax
from jax.experimental import pallas as pl
from jax.experimental.pallas import tpu as pltpu


def _round_up(n: int, m: int) -> int:
    return ((n + m - 1) // m) * m


_VMEM_BUDGET = 24 * 1024 * 1024        # conservative: fits v7x's 64 MiB VMEM/TC
_STEP_OVERHEAD_ELEMS = 400_000         # ~0.35 us grid-step overhead, in exp-equivalents


def _pick_tile(n_total: int, dp: int) -> int:
    """Pick a square row/col tile: big enough to amortize per-step overhead and
    B re-streaming, small enough for VMEM, without the padding-waste cliff."""
    def fits(t):
        # double-buffered bf16 A/B tiles + ~3 live (t, t) f32 intermediates.
        return 2 * 2 * t * dp * 2 + 3 * t * t * 4 <= _VMEM_BUDGET

    if n_total <= 1024:
        t = _round_up(n_total, 8)       # single tile -> zero padding waste
        if fits(t):
            return t
    best_t, best_cost = 128, None
    for t in (1024, 896, 768, 640, 512, 384, 256, 128):   # multiples of 128
        if not fits(t):
            continue
        n_pad = _round_up(n_total, t)
        nt = n_pad // t
        steps = nt * (nt // 2 + 1)      # round-robin half cover of tile pairs
        cost = steps * (t * t + _STEP_OVERHEAD_ELEMS)
        if best_cost is None or cost < best_cost:
            best_t, best_cost = t, cost
    return best_t


def _wrap_idx(i, s, nt: int):
    """j = (i + s) mod nt without a mod op (i < nt, s <= nt//2)."""
    j = i + s
    return jnp.where(j >= nt, j - nt, j)


def _mmd_pair_kernel(a_ref, b_ref, csqi_ref, csqj_ref, wi_ref, wj_ref, out_ref,
                     *, inv_d2, nt, exp_dtype):
    """One (T, T) tile pair of the fused symmetric MMD Gram.

    a_ref   : (T, Dp) bf16 rows of c for row tile i           (MXU operand)
    b_ref   : (T, Dp) bf16 rows of c for col tile j=(i+s)%nt  (MXU operand)
    csqi_ref: (T, 1)  f32 |c_i|^2  (norms stay f32, outside the bf16 matmul)
    csqj_ref: (1, T)  f32 |c_j|^2
    wi_ref  : (T, 1)  signed row weights (+1/Nx | -1/Nz | 0 for padding rows)
    wj_ref  : (1, T)  same weights, lane layout
    out_ref : (T, 1)  f32 partial sums, resident across the s grid axis.

    Only a half cover of tile pairs is evaluated; off-diagonal pairs are
    weighted x2, so ONLY jnp.sum(out) is meaningful (not individual rows).
    """
    s = pl.program_id(1)

    @pl.when(s == 0)
    def _():
        out_ref[...] = jnp.zeros_like(out_ref)

    # dot[i, j] = c_i . c_j  (bf16 operands, f32 accumulation on the MXU).
    dot = lax.dot_general(
        a_ref[...], b_ref[...],
        dimension_numbers=(((1,), (1,)), ((), ())),
        preferred_element_type=jnp.float32,
    )
    # exponent = -||c_i - c_j||^2 / D^2, norms added back in f32 (no cancellation
    # through bf16), clamped to <= 0 to guard fp rounding of near-duplicates.
    expo = (2.0 * dot - csqi_ref[...] - csqj_ref[...]) * inv_d2
    expo = jnp.minimum(expo, 0.0)
    k = jnp.exp(expo.astype(exp_dtype)).astype(jnp.float32)   # EUP (bf16 on v6e/v7x)

    row = jnp.sum(k * wj_ref[...], axis=1, keepdims=True)     # (T, 1)

    if nt == 1:
        factor = jnp.float32(1.0)
    else:
        # Off-diagonal tile pairs stand in for (i,j) AND (j,i) -> x2.
        factor = jnp.where(s == 0, 1.0, 2.0).astype(jnp.float32)
        if nt % 2 == 0:
            # For even nt, the s == nt/2 pairs are reached from both ends -> x1 each.
            factor = jnp.where(s == nt // 2, 1.0, factor)
    out_ref[...] += (factor * wi_ref[...]) * row


@functools.lru_cache(maxsize=None)
def _default_exp_dtype():
    """bf16 exp only where the EUP has a bf16 path (v6e / v7x); f32 elsewhere."""
    try:
        kind = jax.devices()[0].device_kind.lower()
    except Exception:
        return jnp.float32
    if ("v6" in kind) or ("v7" in kind) or ("7x" in kind):
        return jnp.bfloat16
    return jnp.float32


@functools.partial(jax.jit, static_argnames=("exp_dtype",))
def _mmd_pallas(x, z, exp_dtype=jnp.float32):
    """kernel(x,x).mean() + kernel(z,z).mean() - 2*kernel(x,z).mean(), with
    kernel(a,b)[i,j] = exp(-||a_i - b_j||^2 / D^2), computed as ONE fused
    symmetric Gram over c = concat(x, z):
        loss = sum_ij a_i a_j exp(-||c_i - c_j||^2 / D^2)
    with a_i = +1/Nx (x rows), -1/Nz (z rows), 0 (padding rows)."""
    x = x.astype(jnp.float32)
    z = z.astype(jnp.float32)
    nx, d = x.shape
    nz, _ = z.shape
    inv_d2 = 1.0 / float(d * d)          # uses the ORIGINAL (unpadded) D

    dp = _round_up(d, 128)               # lane-pad features; zero cols are inert
    n_total = nx + nz
    tile = _pick_tile(n_total, dp)
    n_pad = _round_up(n_total, tile)
    nt = n_pad // tile

    # Concatenated, padded rows; zero-weight padding rows never contribute.
    c = jnp.concatenate([x, z], axis=0)
    c = jnp.pad(c, ((0, n_pad - n_total), (0, dp - d)))
    csq = jnp.sum(c * c, axis=1, keepdims=True)               # (n_pad, 1) f32 norms
    csq_row = jnp.reshape(csq, (1, n_pad))                    # (1, n_pad)
    c_bf = c.astype(jnp.bfloat16)                             # MXU operands only

    w = jnp.concatenate([
        jnp.full((nx,), 1.0 / nx, jnp.float32),
        jnp.full((nz,), -1.0 / nz, jnp.float32),
        jnp.zeros((n_pad - n_total,), jnp.float32),
    ])
    w_col = w[:, None]                   # (n_pad, 1) sublane layout
    w_row = w[None, :]                   # (1, n_pad) lane layout

    grid = (nt, nt // 2 + 1)             # (row tile i [parallel], round-robin s)
    steps = nt * (nt // 2 + 1)
    cost = pl.CostEstimate(
        flops=steps * (2 * tile * tile * dp + 8 * tile * tile),
        transcendentals=steps * tile * tile,
        bytes_accessed=(2 * steps * tile * dp * 2    # bf16 A & B tile streams
                        + steps * tile * 4 * 4       # csq / weight tiles
                        + n_pad * 4),                # partials writeback
    )

    def j_of(i, s):
        return _wrap_idx(i, s, nt)

    partials = pl.pallas_call(
        functools.partial(_mmd_pair_kernel, inv_d2=inv_d2, nt=nt,
                          exp_dtype=exp_dtype),
        out_shape=jax.ShapeDtypeStruct((n_pad, 1), jnp.float32),
        grid=grid,
        in_specs=[
            pl.BlockSpec((tile, dp), lambda i, s: (i, 0)),            # A row tile
            pl.BlockSpec((tile, dp), lambda i, s: (j_of(i, s), 0)),   # B col tile
            pl.BlockSpec((tile, 1), lambda i, s: (i, 0)),             # |c_i|^2
            pl.BlockSpec((1, tile), lambda i, s: (0, j_of(i, s))),    # |c_j|^2
            pl.BlockSpec((tile, 1), lambda i, s: (i, 0)),             # w_i
            pl.BlockSpec((1, tile), lambda i, s: (0, j_of(i, s))),    # w_j
        ],
        out_specs=pl.BlockSpec((tile, 1), lambda i, s: (i, 0)),
        compiler_params=pltpu.CompilerParams(
            dimension_semantics=("parallel", "arbitrary"),
            vmem_limit_bytes=40 * 1024 * 1024,
        ),
        cost_estimate=cost,
    )(c_bf, c_bf, csq, csq_row, w_col, w_row)

    # Only the total is meaningful: off-diagonal tile pairs were counted x2.
    return jnp.sum(partials)


def mmd_pallas(x, z):
    return _mmd_pallas(x, z, exp_dtype=_default_exp_dtype())


class MMDNormalLossPallas:
    """JAX/Pallas port of MMDNormalLoss (forward only)."""

    def __init__(self, batch_size: int = 128, mu: float = 0.0, sigma: float = 1.0):
        self.batch_size = batch_size
        # Deterministic buffers (match the PyTorch registered buffers).
        self.mu = jnp.array([float(mu)], dtype=jnp.float32)
        self.log_sigma = jnp.array([math.log(sigma)], dtype=jnp.float32)

    def rsample(self, z, key):
        b, z_dim = z.shape
        b = max(b, self.batch_size)
        eps = jax.random.normal(key, (b, z_dim), dtype=z.dtype)
        return jnp.exp(self.log_sigma) * eps + self.mu

    def forward(self, z, key):
        x = self.rsample(z, key)
        return mmd_pallas(x, z)


def _reference_mmd(x, z):
    """Pure-JAX reference matching the PyTorch code literally (broadcasted diff)."""
    def kern(a, b):
        d = a.shape[1]
        diff = a[:, None, :] - b[None, :, :]
        ki = jnp.mean(diff * diff, axis=2) * (1.0 / d)
        return jnp.exp(-ki)
    return kern(x, x).mean() + kern(z, z).mean() - 2.0 * kern(x, z).mean()


if __name__ == "__main__":
    key = jax.random.PRNGKey(0)
    k_z, k_eps, k_z2, k_eps2 = jax.random.split(key, 4)

    exp_dtype = _default_exp_dtype()
    atol = 3e-3 if exp_dtype == jnp.bfloat16 else 3e-4

    # --- check 1: small shapes consistent with the module (single-tile path) ---
    batch, z_dim = 8, 32
    loss_mod = MMDNormalLossPallas(batch_size=16, mu=0.0, sigma=1.0)
    z = jax.random.normal(k_z, (batch, z_dim), dtype=jnp.float32)
    loss = jax.block_until_ready(loss_mod.forward(z, k_eps))
    x_ref = loss_mod.rsample(z, k_eps)     # same key -> same draw as forward()
    ref = _reference_mmd(x_ref, z)
    assert jnp.allclose(loss, ref, atol=atol, rtol=1e-3), (loss, ref)

    # --- check 2: multi-tile path (even #row-tiles exercises the round-robin
    #     wrap and the double-visited s == nt/2 column) ---
    batch2, z_dim2 = 500, 16
    loss_mod2 = MMDNormalLossPallas(batch_size=1500, mu=0.0, sigma=1.0)
    z2 = 0.5 + jax.random.normal(k_z2, (batch2, z_dim2), dtype=jnp.float32)
    loss2 = jax.block_until_ready(loss_mod2.forward(z2, k_eps2))
    x2 = loss_mod2.rsample(z2, k_eps2)
    ref2 = _reference_mmd(x2, z2)
    assert jnp.allclose(loss2, ref2, atol=atol, rtol=1e-3), (loss2, ref2)

    print("KERNEL_OK")
</pallas_src>

<mosaic_0001>
module attributes {stable_mosaic.version = 11 : i64} {
  func.func @_mmd_pair_kernel(%arg0: i32, %arg1: i32, %arg2: memref<24x128xbf16, #tpu.memory_space<vmem>>, %arg3: memref<24x128xbf16, #tpu.memory_space<vmem>>, %arg4: memref<24x1xf32, #tpu.memory_space<vmem>>, %arg5: memref<1x24xf32, #tpu.memory_space<vmem>>, %arg6: memref<24x1xf32, #tpu.memory_space<vmem>>, %arg7: memref<1x24xf32, #tpu.memory_space<vmem>>, %arg8: memref<24x1xf32, #tpu.memory_space<vmem>>) attributes {dimension_semantics = [#tpu.dimension_semantics<parallel>, #tpu.dimension_semantics<arbitrary>], iteration_bounds = array<i64: 1, 1>, scalar_prefetch = 0 : i64, scratch_operands = 0 : i64, tpu.core_type = #tpu.core_type<tc>, window_params = [{transform_indices = @transform_0, window_bounds = array<i64: 24, 128>}, {transform_indices = @transform_1, window_bounds = array<i64: 24, 128>}, {transform_indices = @transform_2, window_bounds = array<i64: 24, 1>}, {transform_indices = @transform_3, window_bounds = array<i64: 1, 24>}, {transform_indices = @transform_4, window_bounds = array<i64: 24, 1>}, {transform_indices = @transform_5, window_bounds = array<i64: 1, 24>}, {transform_indices = @transform_6, window_bounds = array<i64: 24, 1>}]} {
    %c0_i32 = arith.constant 0 : i32
    %0 = arith.cmpi eq, %arg1, %c0_i32 : i32
    %1 = arith.extui %0 : i1 to i32
    %c0_i32_0 = arith.constant 0 : i32
    %2 = arith.cmpi ne, %1, %c0_i32_0 : i32
    scf.if %2 {
      %cst_21 = arith.constant 0.000000e+00 : f32
      %31 = vector.broadcast %cst_21 : f32 to vector<24x1xf32>
      %c0_22 = arith.constant 0 : index
      %c0_23 = arith.constant 0 : index
      %32 = vector.load %arg8[%c0_22, %c0_23] : memref<24x1xf32, #tpu.memory_space<vmem>>, vector<24x1xf32>
      tpu.vector_store %arg8[%c0_22, %c0_23], %31 {strides = array<i32>} : memref<24x1xf32, #tpu.memory_space<vmem>>, vector<24x1xf32>,
    } else {
    }
    %c0 = arith.constant 0 : index
    %c0_1 = arith.constant 0 : index
    %3 = vector.load %arg2[%c0, %c0_1] : memref<24x128xbf16, #tpu.memory_space<vmem>>, vector<24x128xbf16>
    %c0_2 = arith.constant 0 : index
    %c0_3 = arith.constant 0 : index
    %4 = vector.load %arg3[%c0_2, %c0_3] : memref<24x128xbf16, #tpu.memory_space<vmem>>, vector<24x128xbf16>
    %cst = arith.constant dense<0.000000e+00> : vector<24x24xf32>
    %5 = tpu.matmul %3, %4, %cst {dimension_numbers = #tpu.dot_dimension_numbers<[1], [1], [0], [0], [0, 0, 1, 0], [], []>} : vector<24x128xbf16>, vector<24x128xbf16>, vector<24x24xf32> -> vector<24x24xf32>
    %cst_4 = arith.constant 2.000000e+00 : f32
    %6 = vector.broadcast %cst_4 : f32 to vector<24x24xf32>
    %7 = arith.mulf %6, %5 : vector<24x24xf32>
    %c0_5 = arith.constant 0 : index
    %c0_6 = arith.constant 0 : index
    %8 = vector.load %arg4[%c0_5, %c0_6] : memref<24x1xf32, #tpu.memory_space<vmem>>, vector<24x1xf32>
    %9 = vector.broadcast %8 : vector<24x1xf32> to vector<24x24xf32>
    %10 = arith.subf %7, %9 : vector<24x24xf32>
    %c0_7 = arith.constant 0 : index
    %c0_8 = arith.constant 0 : index
    %11 = vector.load %arg5[%c0_7, %c0_8] : memref<1x24xf32, #tpu.memory_space<vmem>>, vector<1x24xf32>
    %12 = vector.broadcast %11 : vector<1x24xf32> to vector<24x24xf32>
    %13 = arith.subf %10, %12 : vector<24x24xf32>
    %cst_9 = arith.constant 9.765625E-4 : f32
    %14 = vector.broadcast %cst_9 : f32 to vector<24x24xf32>
    %15 = arith.mulf %13, %14 : vector<24x24xf32>
    %cst_10 = arith.constant 0.000000e+00 : f32
    %16 = vector.broadcast %cst_10 : f32 to vector<24x24xf32>
    %17 = arith.minimumf %15, %16 : vector<24x24xf32>
    %18 = math.exp %17 : vector<24x24xf32>
    %c0_11 = arith.constant 0 : index
    %c0_12 = arith.constant 0 : index
    %19 = vector.load %arg7[%c0_11, %c0_12] : memref<1x24xf32, #tpu.memory_space<vmem>>, vector<1x24xf32>
    %20 = vector.broadcast %19 : vector<1x24xf32> to vector<24x24xf32>
    %21 = arith.mulf %18, %20 : vector<24x24xf32>
    %cst_13 = arith.constant dense<0.000000e+00> : vector<24xf32>
    %22 = vector.multi_reduction <add>, %21, %cst_13 [1] : vector<24x24xf32> to vector<24xf32>
    %23 = vector.shape_cast %22 : vector<24xf32> to vector<24x1xf32>
    %c0_14 = arith.constant 0 : index
    %c0_15 = arith.constant 0 : index
    %24 = vector.load %arg8[%c0_14, %c0_15] : memref<24x1xf32, #tpu.memory_space<vmem>>, vector<24x1xf32>
    %c0_16 = arith.constant 0 : index
    %c0_17 = arith.constant 0 : index
    %25 = vector.load %arg6[%c0_16, %c0_17] : memref<24x1xf32, #tpu.memory_space<vmem>>, vector<24x1xf32>
    %cst_18 = arith.constant 1.000000e+00 : f32
    %26 = vector.broadcast %cst_18 : f32 to vector<24x1xf32>
    %27 = arith.mulf %26, %25 : vector<24x1xf32>
    %28 = arith.mulf %27, %23 : vector<24x1xf32>
    %29 = arith.addf %24, %28 : vector<24x1xf32>
    %c0_19 = arith.constant 0 : index
    %c0_20 = arith.constant 0 : index
    %30 = vector.load %arg8[%c0_19, %c0_20] : memref<24x1xf32, #tpu.memory_space<vmem>>, vector<24x1xf32>
    tpu.vector_store %arg8[%c0_19, %c0_20], %29 {strides = array<i32>} : memref<24x1xf32, #tpu.memory_space<vmem>>, vector<24x1xf32>,
    return
  }
  func.func @transform_0(%arg0: i32, %arg1: i32) -> (i32, i32) {
    %c0_i32 = arith.constant 0 : i32
    %c0_i32_0 = arith.constant 0 : i32
    return %arg0, %c0_i32 : i32, i32
  }
  func.func @transform_1(%arg0: i32, %arg1: i32) -> (i32, i32) {
    %0 = arith.addi %arg0, %arg1 : i32
    %c1_i32 = arith.constant 1 : i32
    %1 = arith.cmpi sge, %0, %c1_i32 : i32
    %c1_i32_0 = arith.constant 1 : i32
    %2 = arith.subi %0, %c1_i32_0 : i32
    %3 = arith.select %1, %2, %0 : i32
    %c0_i32 = arith.constant 0 : i32
    %c0_i32_1 = arith.constant 0 : i32
    return %3, %c0_i32 : i32, i32
  }
  func.func @transform_2(%arg0: i32, %arg1: i32) -> (i32, i32) {
    %c0_i32 = arith.constant 0 : i32
    %c0_i32_0 = arith.constant 0 : i32
    return %arg0, %c0_i32 : i32, i32
  }
  func.func @transform_3(%arg0: i32, %arg1: i32) -> (i32, i32) {
    %0 = arith.addi %arg0, %arg1 : i32
    %c1_i32 = arith.constant 1 : i32
    %1 = arith.cmpi sge, %0, %c1_i32 : i32
    %c1_i32_0 = arith.constant 1 : i32
    %2 = arith.subi %0, %c1_i32_0 : i32
    %3 = arith.select %1, %2, %0 : i32
    %c0_i32 = arith.constant 0 : i32
    %c0_i32_1 = arith.constant 0 : i32
    return %c0_i32, %3 : i32, i32
  }
  func.func @transform_4(%arg0: i32, %arg1: i32) -> (i32, i32) {
    %c0_i32 = arith.constant 0 : i32
    %c0_i32_0 = arith.constant 0 : i32
    return %arg0, %c0_i32 : i32, i32
  }
  func.func @transform_5(%arg0: i32, %arg1: i32) -> (i32, i32) {
    %0 = arith.addi %arg0, %arg1 : i32
    %c1_i32 = arith.constant 1 : i32
    %1 = arith.cmpi sge, %0, %c1_i32 : i32
    %c1_i32_0 = arith.constant 1 : i32
    %2 = arith.subi %0, %c1_i32_0 : i32
    %3 = arith.select %1, %2, %0 : i32
    %c0_i32 = arith.constant 0 : i32
    %c0_i32_1 = arith.constant 0 : i32
    return %c0_i32, %3 : i32, i32
  }
  func.func @transform_6(%arg0: i32, %arg1: i32) -> (i32, i32) {
    %c0_i32 = arith.constant 0 : i32
    %c0_i32_0 = arith.constant 0 : i32
    return %arg0, %c0_i32 : i32, i32
  }
}

</mosaic_0001>

<bundles_post_ra>
// kernel: _mmd_pallas.1
= control target key start
LH: loop header
LB: loop body
LE: loop exit
PB: predicated region body
PF: predicated region fallthrough
CT: control target
= control target key end

     0   :  { %v331_v1 = vmov 0   ;;  %vm123_vm0 = vcmask 7168   ;;  %v332_v8 = vmov 0.0   ;;  %vm257_vm1 = vcmask 195584   ;;  %s437_s1 = inlined_call_operand.vmem [shape: bf16[24,128], index: 1, kind: input, shape index: {}, may-alias: {0,1}]   ;;  %s438_s0 = inlined_call_operand.vmem [shape: bf16[24,128], index: 0, kind: input, shape index: {}, may-alias: {0,1}]   ;;  %s439_s2 = inlined_call_operand.vmem [shape: f32[24,1], index: 2, kind: input, shape index: {}]   ;;  %s440_s6 = inlined_call_operand.vmem [shape: f32[24,1], index: 6, kind: output, shape index: {}]   ;;  %s441_s3 = inlined_call_operand.vmem [shape: f32[1,24], index: 3, kind: input, shape index: {}]   ;;  %s442_s5 = inlined_call_operand.vmem [shape: f32[1,24], index: 5, kind: input, shape index: {}]   ;;  %s443_s4 = inlined_call_operand.vmem [shape: f32[24,1], index: 4, kind: input, shape index: {}]  }
   0x1   :  { %v321_v0 = vld [vmem:[%s437_s1] sm:$0xff]   ;;  %319 = vset.pattern.permute.xlu0 %v331_v1  ;;  %320 = vset.pattern.permute.xlu1 %v331_v1  ;;  %v322_v2 = vld [vmem:[%s437_s1 + $0x8] ss:$0 sps:$4 sm:$0xff]   ;;  %v206_v5 = vld [vmem:[%s439_s2 + $0x10] sm:$0xff]  ;;  %124 = vst.msk [vmem:[%s440_s6] sm:$0xff] %vm123_vm0, %v332_v8 }
   0x2   :  { %309 = vmatprep.subr.bf16.mxu0 %v321_v0  ;;  %v323_v3 = vld [vmem:[%s438_s0] sm:$0xff]   ;;  %219 = vperm.xlu1 %320, %v206_v5   ;;  %v205_v6 = vld [vmem:[%s439_s2 + $0x8] sm:$0xff]  ;;  %125 = vst.msk [vmem:[%s440_s6 + $0x8] sm:$0xff] %vm123_vm0, %v332_v8  ;;  %126 = vst.msk [vmem:[%s440_s6 + $0x10] sm:$0xff] %vm123_vm0, %v332_v8 }
   0x3   :  { %310 = vmatpush3.bf16.xpose.msra.mxu0 %v321_v0  ;;  %v204_v4 = vld [vmem:[%s439_s2] sm:$0xff]  ;;  %313 = vmatprep.mubr.bf16.mxu0 %v323_v3  ;;  %v324_v7 = vld [vmem:[%s438_s0 + $0x8] ss:$0 sps:$4 sm:$0xff]   ;;  %v272_v54 = vld [vmem:[%s443_s4 + $0x10] sm:$0xff] }
   0x4   :  { %311 = vmatprep.subr.bf16.mxu0 %v322_v2  ;;  %209 = vperm.xlu0 %319, %v204_v4   ;;  %v303_v15 = vld [vmem:[%s441_s3] ss:$0 sm:$0xff]  ;;  %v271_v48 = vld [vmem:[%s443_s4 + $0x8] sm:$0xff] }
   0x5   :  { %v304_v35 = vld [vmem:[%s442_s5] ss:$0 sm:$0xff] }
   0x6   :  { %v270_v45 = vld [vmem:[%s443_s4] sm:$0xff] }
   0x8   :  { %214 = vperm.xlu0 %319, %v205_v6   ;;  %v267_v46 = vld [vmem:[%s440_s6] sm:$0xff] }
   0x9   :  { %v268_v50 = vld [vmem:[%s440_s6 + $0x8] sm:$0xff]  ;;  %v269_v56 = vld [vmem:[%s440_s6 + $0x10] sm:$0xff] }
   0xb   :  { %312 = vmatpush3.bf16.xpose.msra.mxu0 %v322_v2 }
  0x12   :  { %314 = vmatmul.mubr.bf16.vlgmr.msra.gmra.mrb[0].mxu0 %v324_v7 }
  0x81   :  { %v220_v11 = vpop.permute.xlu1 %219 }
  0x83   :  { %v210_v9 = vpop.permute.xlu0 %209 }
  0x87   :  { %v215_v21 = vpop.permute.xlu0 %214 }
  0xe5   :  { %v315_v10 = vpop.f32.mrb[0].mxu0 }
  0xe6   :  { %v203_v12 = vmul.f32 2.0, %v315_v10  ;;  %v187_v13 = vpop.f32.mrb[1].mxu0 }
  0xe7   :  { %v201_v14 = vmul.f32 2.0, %v187_v13  ;;  %v316_v16 = vpop.f32.mrb[2].mxu0 }
  0xe8   :  { %v224_v17 = vsub.f32 %v203_v12, %v220_v11  ;;  %v190_v18 = vpop.f32.mrb[3].mxu0 }
  0xe9   :  { %v222_v19 = vsub.f32 %v201_v14, %v210_v9  ;;  %v202_v20 = vmul.f32 2.0, %v190_v18 }
  0xea   :  { %v234_v22 = vsub.f32 %v224_v17, %v303_v15 }
  0xeb   :  { %v232_v23 = vsub.f32 %v222_v19, %v303_v15  ;;  %v223_v24 = vsub.f32 %v202_v20, %v215_v21 }
  0xec   :  { %v237_v25 = vmul.f32 0.0009765625, %v234_v22 }
  0xed   :  { %v235_v26 = vmul.f32 0.0009765625, %v232_v23  ;;  %v233_v27 = vsub.f32 %v223_v24, %v303_v15 }
  0xee   :  { %v240_v28 = vmin.f32 %v237_v25, 0.0 }
  0xef   :  { %v238_v29 = vmin.f32 %v235_v26, 0.0  ;;  %v236_v30 = vmul.f32 0.0009765625, %v233_v27 }
  0xf0   :  { %v245_v31 = vmul.f32 1.442695, %v240_v28 }
  0xf1   :  { %v241_v32 = vmul.f32 1.442695, %v238_v29  ;;  %v239_v33 = vmin.f32 %v236_v30, 0.0 }
  0xf3   :  { %325 = vpow2.f32 %v241_v32  ;;  %v243_v34 = vmul.f32 1.442695, %v239_v33 }
  0xf4   :  { %327 = vpow2.f32 %v245_v31 }
  0xf5   :  { %329 = vpow2.f32 %v243_v34 }
  0xfd   :  { %v326_v36 = vpop.eup %325 }
  0xfe   :  { %v328_v37 = vpop.eup %327  ;;  %v254_v38 = vmul.f32 %v326_v36, %v304_v35 }
  0xff   :  { %v330_v39 = vpop.eup %329  ;;  %v256_v43 = vmul.f32 %v328_v37, %v304_v35 }
 0x100   :  { %v258_v40 = vsel %vm257_vm1, %v254_v38, 0.0  ;;  %v255_v41 = vmul.f32 %v330_v39, %v304_v35 }
 0x101   :  { %259 = vadd.xlane.f32.xlu1 %v258_v40  ;;  %v264_v44 = vsel %vm257_vm1, %v256_v43, 0.0 }
 0x102   :  { %v261_v42 = vsel %vm257_vm1, %v255_v41, 0.0 }
 0x103   :  { %262 = vadd.xlane.f32.xlu0 %v261_v42 }
 0x107   :  { %265 = vadd.xlane.f32.xlu0 %v264_v44 }
 0x18e   :  { %v260_v47 = vpop.xlane.xlu1 %259 }
 0x18f   :  { %v273_v49 = vmul.f32 %v270_v45, %v260_v47 }
 0x190   :  { %v263_v51 = vpop.xlane.xlu0 %262 }
 0x191   :  { %v276_v52 = vadd.f32 %v273_v49, %v267_v46  ;;  %v274_v53 = vmul.f32 %v271_v48, %v263_v51 }
 0x193   :  { %280 = vst.msk [vmem:[%s440_s6] sm:$0xff] %vm123_vm0, %v276_v52  ;;  %v277_v55 = vadd.f32 %v274_v53, %v268_v50 }
 0x194   :  { %v266_v57 = vpop.xlane.xlu0 %265 }
 0x195   :  { %281 = vst.msk [vmem:[%s440_s6 + $0x8] sm:$0xff] %vm123_vm0, %v277_v55  ;;  %v275_v58 = vmul.f32 %v272_v54, %v266_v57 }
 0x197   :  { %v278_v59 = vadd.f32 %v275_v58, %v269_v56 }
 0x199   :  { %282 = vst.msk [vmem:[%s440_s6 + $0x10] sm:$0xff] %vm123_vm0, %v278_v59 }

</bundles_post_ra>
